<compile_context>
chip_gen: v5e
topology: v5e:2x2
jax: 0.10.0
libtpu: 0.0.40
codegen_flags: <defaults>
</compile_context>

<pallas_src>
import jax
import jax.numpy as jnp
from jax import lax
from jax.experimental import pallas as pl
from jax.experimental.pallas import tpu as pltpu


def lstm_encoder_kernel(tok_ref, table_ref, whh_ref, len_ref, out_ref):
    """Fused embedding + input projection + LSTM recurrence (packed-sequence semantics).

    tok_ref:   (T*B, 1) int32   time-major token ids (row t*B + b = example b at step t)
    table_ref: (V, 4H)  bf16    embedding @ W_ih^T + (b_ih + b_hh), precombined at init
    whh_ref:   (H, 4H)  bf16    W_hh^T (PyTorch gate order i, f, g, o)
    len_ref:   (B, 1)   int32   sequence lengths
    out_ref:   (B, T, H) f32    batch-first padded outputs (0.0 beyond seq_len)
    """
    B, T, H = out_ref.shape
    V = table_ref.shape[0]
    G = 4 * H

    # ---- fused embedding lookup + input projection + bias, hoisted over all T steps ----
    # one_hot(token) @ (embedding @ W_ih^T + b)  ==  embed(token) @ W_ih^T + b
    tok = tok_ref[...]                                                # (T*B, 1) i32
    vocab_iota = lax.broadcasted_iota(jnp.int32, (T * B, V), 1)
    onehot = jnp.where(vocab_iota == tok, 1.0, 0.0).astype(jnp.bfloat16)
    gates_x = jnp.dot(onehot, table_ref[...],
                      preferred_element_type=jnp.float32)             # (T*B, 4H) f32

    # Per-step gate slices hoisted off the recurrence: independent of h/c, so the sublane
    # extracts overlap the serial h @ W_hh chain instead of sitting on it.
    gx = [gates_x[t * B:(t + 1) * B, :] for t in range(T)]

    whh = whh_ref[...]                                                # (H, 4H) bf16

    # One tanh pass covers all four gates:
    #   i/f/o lanes: sigmoid(x) = 0.5 * tanh(0.5 x) + 0.5      g lanes: tanh(x)
    lane = lax.broadcasted_iota(jnp.int32, (B, G), 1)
    g_lanes = (lane >= 2 * H) & (lane < 3 * H)
    scale = jnp.where(g_lanes, 1.0, 0.5)                              # (B, 4H) f32
    offset = jnp.where(g_lanes, 0.0, 0.5)                             # (B, 4H) f32

    # seq-length mask hoisted: per step only a compare against an immediate remains.
    lens_bh = jnp.broadcast_to(len_ref[...], (B, H))                  # (B, H) i32

    # vreg-resident recurrent state
    h = jnp.zeros((B, H), jnp.float32)
    c = jnp.zeros((B, H), jnp.float32)

    # T is a small compile-time constant: fully unroll so the scheduler sees the whole chain.
    # TODO(synk): for long T switch to lax.fori_loop(..., unroll=k) to bound vreg pressure,
    #             and keep W_hh resident in the MXU via pltpu.matmul_push_rhs/acc_lhs/pop.
    for t in range(T):
        # bf16 operands, f32 accumulation: native single-pass MXU matmul on the serial path.
        gates = gx[t] + jnp.dot(h.astype(jnp.bfloat16), whh,
                                preferred_element_type=jnp.float32)   # (B, 4H) f32

        act = jnp.tanh(gates * scale) * scale + offset                # single EUP pass
        i = act[:, 0:H]
        f = act[:, H:2 * H]
        g = act[:, 2 * H:3 * H]
        o = act[:, 3 * H:4 * H]

        c_new = f * c + i * g
        h_new = o * jnp.tanh(c_new)

        # packed-sequence semantics: freeze state / emit zeros once past seq_len[b]
        valid = lens_bh > t                                           # (B, H) bool
        h = jnp.where(valid, h_new, h)
        c = jnp.where(valid, c_new, c)
        # batch-first store (no wrapper transpose); store is off the dependency chain.
        out_ref[:, t, :] = jnp.where(valid, h_new, 0.0)


def init_params(key, n_vocab, n_dim_embedding, n_dim_lstm_hidden):
    """Deterministic parameter init mirroring the shapes of nn.Embedding + nn.LSTM."""
    k_emb, k_wih, k_whh, k_bih, k_bhh = jax.random.split(key, 5)
    H = n_dim_lstm_hidden
    bound = 1.0 / jnp.sqrt(jnp.float32(H))

    embedding = jax.random.normal(k_emb, (n_vocab, n_dim_embedding), jnp.float32)
    embedding = embedding.at[0].set(0.0)  # padding_idx=0

    w_ih = jax.random.uniform(k_wih, (4 * H, n_dim_embedding), jnp.float32, -bound, bound)
    w_hh = jax.random.uniform(k_whh, (4 * H, H), jnp.float32, -bound, bound)
    b_ih = jax.random.uniform(k_bih, (4 * H,), jnp.float32, -bound, bound)
    b_hh = jax.random.uniform(k_bhh, (4 * H,), jnp.float32, -bound, bound)
    return {"embedding": embedding, "w_ih": w_ih, "w_hh": w_hh, "b_ih": b_ih, "b_hh": b_hh}


def prepare_params(params):
    """One-time preprocessing so the per-call wrapper carries zero weight-layout glue.

    Folds embedding, W_ih and the summed bias into a single (V, 4H) token->gates table
    (exact: each one-hot row has exactly one 1), and pre-transposes W_hh.  Both are cast to
    bf16 for the MXU; accumulation stays f32 in-kernel.
    """
    table = (params["embedding"] @ params["w_ih"].T
             + (params["b_ih"] + params["b_hh"])[None, :])            # (V, 4H) f32
    return {
        "tok_gate_table": table.astype(jnp.bfloat16),                 # (V, 4H)
        "w_hh_t": params["w_hh"].T.astype(jnp.bfloat16),              # (H, 4H)
    }


def lstm_encoder_forward(x_seq, seq_len, prepared):
    """Equivalent of LSTMEncoder.forward (n_lstm_layer=1, bidirectional=False,
    highway=False, return_state=False).

    x_seq:   (B, T) int32 token indices (padded with 0)
    seq_len: (B,)   int32 sequence lengths (descending, as pack_padded_sequence requires)
    returns: (h: (B, T, H) f32, seq_len)
    """
    B, T = x_seq.shape
    H = prepared["w_hh_t"].shape[0]

    # Only remaining glue: a 64-byte int transpose to time-major token order.
    tok_tm = jnp.transpose(x_seq.astype(jnp.int32)).reshape(T * B, 1)
    lens = seq_len.astype(jnp.int32).reshape(B, 1)

    # TODO(synk): for large batch, add a grid over B with dimension_semantics=("parallel",)
    #             so the batch-parallel recurrence uses both v7x TensorCores.
    h = pl.pallas_call(
        lstm_encoder_kernel,
        out_shape=jax.ShapeDtypeStruct((B, T, H), jnp.float32),
        in_specs=[pl.BlockSpec(memory_space=pltpu.MemorySpace.VMEM)] * 4,
        out_specs=pl.BlockSpec(memory_space=pltpu.MemorySpace.VMEM),
    )(tok_tm, prepared["tok_gate_table"], prepared["w_hh_t"], lens)
    return h, seq_len


def _reference_forward(x_seq, seq_len, params):
    """Pure-JAX f32 reference (module math) used only to sanity-check the kernel."""
    emb = jnp.take(params["embedding"], x_seq, axis=0)  # (B, T, E)
    B, T, E = emb.shape
    H = params["w_hh"].shape[1]
    w_ih_t = params["w_ih"].T
    w_hh_t = params["w_hh"].T
    b = params["b_ih"] + params["b_hh"]

    def step(carry, xt_and_t):
        h, c = carry
        x_t, t = xt_and_t
        gates = x_t @ w_ih_t + h @ w_hh_t + b
        i = jax.nn.sigmoid(gates[:, 0:H])
        f = jax.nn.sigmoid(gates[:, H:2 * H])
        g = jnp.tanh(gates[:, 2 * H:3 * H])
        o = jax.nn.sigmoid(gates[:, 3 * H:4 * H])
        c_new = f * c + i * g
        h_new = o * jnp.tanh(c_new)
        mask = (t < seq_len)[:, None]
        h = jnp.where(mask, h_new, h)
        c = jnp.where(mask, c_new, c)
        out = jnp.where(mask, h_new, 0.0)
        return (h, c), out

    x_tm = jnp.transpose(emb, (1, 0, 2))
    (_, _), outs = lax.scan(step, (jnp.zeros((B, H)), jnp.zeros((B, H))),
                            (x_tm, jnp.arange(T)))
    return jnp.transpose(outs, (1, 0, 2))


if __name__ == "__main__":
    # Module hyperparameters (small, consistent with the forward pass)
    n_vocab, n_dim_embedding, n_dim_lstm_hidden = 32, 16, 32
    B, T = 2, 8

    key = jax.random.PRNGKey(0)
    k_params, k_tokens = jax.random.split(key)
    params = init_params(k_params, n_vocab, n_dim_embedding, n_dim_lstm_hidden)
    prepared = prepare_params(params)

    # Build padded token batch; lengths descending (pack_padded_sequence contract).
    seq_len = jnp.array([8, 5], dtype=jnp.int32)
    tokens = jax.random.randint(k_tokens, (B, T), 1, n_vocab, dtype=jnp.int32)
    pos = jnp.arange(T)[None, :]
    x_seq = jnp.where(pos < seq_len[:, None], tokens, 0)  # pad index 0

    fwd = jax.jit(lstm_encoder_forward)
    h, out_len = fwd(x_seq, seq_len, prepared)
    h = jax.block_until_ready(h)

    h_ref = _reference_forward(x_seq, seq_len, params)
    assert h.shape == (B, T, n_dim_lstm_hidden)
    # Tolerance loosened for bf16 MXU operands (f32 accumulation).
    assert jnp.allclose(h, h_ref, atol=3e-2, rtol=3e-2)
    assert bool(jnp.all(out_len == seq_len))

    print("KERNEL_OK")
</pallas_src>

<mosaic_0001>
module attributes {stable_mosaic.version = 11 : i64} {
  func.func @lstm_encoder_kernel(%arg0: memref<16x1xi32, #tpu.memory_space<vmem>>, %arg1: memref<32x128xbf16, #tpu.memory_space<vmem>>, %arg2: memref<32x128xbf16, #tpu.memory_space<vmem>>, %arg3: memref<2x1xi32, #tpu.memory_space<vmem>>, %arg4: memref<2x8x32xf32, #tpu.memory_space<vmem>>) attributes {dimension_semantics = [], scalar_prefetch = 0 : i64, scratch_operands = 0 : i64, tpu.core_type = #tpu.core_type<tc>} {
    %c0 = arith.constant 0 : index
    %c0_0 = arith.constant 0 : index
    %0 = vector.load %arg0[%c0, %c0_0] : memref<16x1xi32, #tpu.memory_space<vmem>>, vector<16x1xi32>
    %1 = tpu.iota {dimensions = array<i32: 1>} : vector<16x32xi32>
    %2 = vector.broadcast %0 : vector<16x1xi32> to vector<16x32xi32>
    %3 = arith.cmpi eq, %1, %2 : vector<16x32xi32>
    %cst = arith.constant 1.000000e+00 : f32
    %cst_1 = arith.constant 0.000000e+00 : f32
    %4 = vector.broadcast %cst : f32 to vector<16x32xf32>
    %5 = vector.broadcast %cst_1 : f32 to vector<16x32xf32>
    %6 = arith.select %3, %4, %5 : vector<16x32xi1>, vector<16x32xf32>
    %7 = arith.truncf %6 : vector<16x32xf32> to vector<16x32xbf16>
    %c0_2 = arith.constant 0 : index
    %c0_3 = arith.constant 0 : index
    %8 = vector.load %arg1[%c0_2, %c0_3] : memref<32x128xbf16, #tpu.memory_space<vmem>>, vector<32x128xbf16>
    %cst_4 = arith.constant dense<0.000000e+00> : vector<16x128xf32>
    %9 = tpu.matmul %7, %8, %cst_4 {dimension_numbers = #tpu.dot_dimension_numbers<[1], [0], [0], [1], [0, 0, 1, 1], [], []>} : vector<16x32xbf16>, vector<32x128xbf16>, vector<16x128xf32> -> vector<16x128xf32>
    %10 = vector.extract_strided_slice %9 {offsets = [0, 0], sizes = [2, 128], strides = [1, 1]} : vector<16x128xf32> to vector<2x128xf32>
    %11 = vector.extract_strided_slice %9 {offsets = [2, 0], sizes = [2, 128], strides = [1, 1]} : vector<16x128xf32> to vector<2x128xf32>
    %12 = vector.extract_strided_slice %9 {offsets = [4, 0], sizes = [2, 128], strides = [1, 1]} : vector<16x128xf32> to vector<2x128xf32>
    %13 = vector.extract_strided_slice %9 {offsets = [6, 0], sizes = [2, 128], strides = [1, 1]} : vector<16x128xf32> to vector<2x128xf32>
    %14 = vector.extract_strided_slice %9 {offsets = [8, 0], sizes = [2, 128], strides = [1, 1]} : vector<16x128xf32> to vector<2x128xf32>
    %15 = vector.extract_strided_slice %9 {offsets = [10, 0], sizes = [2, 128], strides = [1, 1]} : vector<16x128xf32> to vector<2x128xf32>
    %16 = vector.extract_strided_slice %9 {offsets = [12, 0], sizes = [2, 128], strides = [1, 1]} : vector<16x128xf32> to vector<2x128xf32>
    %17 = vector.extract_strided_slice %9 {offsets = [14, 0], sizes = [2, 128], strides = [1, 1]} : vector<16x128xf32> to vector<2x128xf32>
    %c0_5 = arith.constant 0 : index
    %c0_6 = arith.constant 0 : index
    %18 = vector.load %arg2[%c0_5, %c0_6] : memref<32x128xbf16, #tpu.memory_space<vmem>>, vector<32x128xbf16>
    %19 = tpu.iota {dimensions = array<i32: 1>} : vector<2x128xi32>
    %c64_i32 = arith.constant 64 : i32
    %20 = vector.broadcast %c64_i32 : i32 to vector<2x128xi32>
    %21 = arith.cmpi sge, %19, %20 : vector<2x128xi32>
    %c96_i32 = arith.constant 96 : i32
    %22 = vector.broadcast %c96_i32 : i32 to vector<2x128xi32>
    %23 = arith.cmpi slt, %19, %22 : vector<2x128xi32>
    %24 = arith.andi %21, %23 : vector<2x128xi1>
    %cst_7 = arith.constant 1.000000e+00 : f32
    %cst_8 = arith.constant 5.000000e-01 : f32
    %25 = vector.broadcast %cst_7 : f32 to vector<2x128xf32>
    %26 = vector.broadcast %cst_8 : f32 to vector<2x128xf32>
    %27 = arith.select %24, %25, %26 : vector<2x128xi1>, vector<2x128xf32>
    %cst_9 = arith.constant 0.000000e+00 : f32
    %cst_10 = arith.constant 5.000000e-01 : f32
    %28 = vector.broadcast %cst_9 : f32 to vector<2x128xf32>
    %29 = vector.broadcast %cst_10 : f32 to vector<2x128xf32>
    %30 = arith.select %24, %28, %29 : vector<2x128xi1>, vector<2x128xf32>
    %c0_11 = arith.constant 0 : index
    %c0_12 = arith.constant 0 : index
    %31 = vector.load %arg3[%c0_11, %c0_12] : memref<2x1xi32, #tpu.memory_space<vmem>>, vector<2x1xi32>
    %32 = vector.shape_cast %31 : vector<2x1xi32> to vector<2x1xi32>
    %33 = vector.broadcast %32 : vector<2x1xi32> to vector<2x32xi32>
    %cst_13 = arith.constant 0.000000e+00 : f32
    %34 = vector.broadcast %cst_13 : f32 to vector<2x32xf32>
    %cst_14 = arith.constant 0.000000e+00 : f32
    %35 = vector.broadcast %cst_14 : f32 to vector<2x32xf32>
    %36 = arith.truncf %34 : vector<2x32xf32> to vector<2x32xbf16>
    %cst_15 = arith.constant dense<0.000000e+00> : vector<2x128xf32>
    %37 = tpu.matmul %36, %18, %cst_15 {dimension_numbers = #tpu.dot_dimension_numbers<[1], [0], [0], [1], [0, 0, 1, 1], [], []>} : vector<2x32xbf16>, vector<32x128xbf16>, vector<2x128xf32> -> vector<2x128xf32>
    %38 = arith.addf %10, %37 : vector<2x128xf32>
    %39 = arith.mulf %38, %27 : vector<2x128xf32>
    %40 = math.tanh %39 : vector<2x128xf32>
    %41 = arith.mulf %40, %27 : vector<2x128xf32>
    %42 = arith.addf %41, %30 : vector<2x128xf32>
    %43 = vector.extract_strided_slice %42 {offsets = [0, 0], sizes = [2, 32], strides = [1, 1]} : vector<2x128xf32> to vector<2x32xf32>
    %44 = vector.extract_strided_slice %42 {offsets = [0, 32], sizes = [2, 32], strides = [1, 1]} : vector<2x128xf32> to vector<2x32xf32>
    %45 = vector.extract_strided_slice %42 {offsets = [0, 64], sizes = [2, 32], strides = [1, 1]} : vector<2x128xf32> to vector<2x32xf32>
    %46 = vector.extract_strided_slice %42 {offsets = [0, 96], sizes = [2, 32], strides = [1, 1]} : vector<2x128xf32> to vector<2x32xf32>
    %47 = arith.mulf %44, %35 : vector<2x32xf32>
    %48 = arith.mulf %43, %45 : vector<2x32xf32>
    %49 = arith.addf %47, %48 : vector<2x32xf32>
    %50 = math.tanh %49 : vector<2x32xf32>
    %51 = arith.mulf %46, %50 : vector<2x32xf32>
    %c0_i32 = arith.constant 0 : i32
    %52 = vector.broadcast %c0_i32 : i32 to vector<2x32xi32>
    %53 = arith.cmpi sgt, %33, %52 : vector<2x32xi32>
    %54 = arith.select %53, %51, %34 : vector<2x32xi1>, vector<2x32xf32>
    %55 = arith.select %53, %49, %35 : vector<2x32xi1>, vector<2x32xf32>
    %cst_16 = arith.constant 0.000000e+00 : f32
    %56 = vector.broadcast %cst_16 : f32 to vector<2x32xf32>
    %57 = arith.select %53, %51, %56 : vector<2x32xi1>, vector<2x32xf32>
    %c0_17 = arith.constant 0 : index
    %c0_18 = arith.constant 0 : index
    %c0_19 = arith.constant 0 : index
    %58 = vector.load %arg4[%c0_17, %c0_18, %c0_19] : memref<2x8x32xf32, #tpu.memory_space<vmem>>, vector<2x1x32xf32>
    %59 = vector.shape_cast %58 : vector<2x1x32xf32> to vector<2x32xf32>
    %60 = vector.shape_cast %57 : vector<2x32xf32> to vector<2x1x32xf32>
    tpu.vector_store %arg4[%c0_17, %c0_18, %c0_19], %60 {strides = array<i32>} : memref<2x8x32xf32, #tpu.memory_space<vmem>>, vector<2x1x32xf32>,
    %61 = arith.truncf %54 : vector<2x32xf32> to vector<2x32xbf16>
    %cst_20 = arith.constant dense<0.000000e+00> : vector<2x128xf32>
    %62 = tpu.matmul %61, %18, %cst_20 {dimension_numbers = #tpu.dot_dimension_numbers<[1], [0], [0], [1], [0, 0, 1, 1], [], []>} : vector<2x32xbf16>, vector<32x128xbf16>, vector<2x128xf32> -> vector<2x128xf32>
    %63 = arith.addf %11, %62 : vector<2x128xf32>
    %64 = arith.mulf %63, %27 : vector<2x128xf32>
    %65 = math.tanh %64 : vector<2x128xf32>
    %66 = arith.mulf %65, %27 : vector<2x128xf32>
    %67 = arith.addf %66, %30 : vector<2x128xf32>
    %68 = vector.extract_strided_slice %67 {offsets = [0, 0], sizes = [2, 32], strides = [1, 1]} : vector<2x128xf32> to vector<2x32xf32>
    %69 = vector.extract_strided_slice %67 {offsets = [0, 32], sizes = [2, 32], strides = [1, 1]} : vector<2x128xf32> to vector<2x32xf32>
    %70 = vector.extract_strided_slice %67 {offsets = [0, 64], sizes = [2, 32], strides = [1, 1]} : vector<2x128xf32> to vector<2x32xf32>
    %71 = vector.extract_strided_slice %67 {offsets = [0, 96], sizes = [2, 32], strides = [1, 1]} : vector<2x128xf32> to vector<2x32xf32>
    %72 = arith.mulf %69, %55 : vector<2x32xf32>
    %73 = arith.mulf %68, %70 : vector<2x32xf32>
    %74 = arith.addf %72, %73 : vector<2x32xf32>
    %75 = math.tanh %74 : vector<2x32xf32>
    %76 = arith.mulf %71, %75 : vector<2x32xf32>
    %c1_i32 = arith.constant 1 : i32
    %77 = vector.broadcast %c1_i32 : i32 to vector<2x32xi32>
    %78 = arith.cmpi sgt, %33, %77 : vector<2x32xi32>
    %79 = arith.select %78, %76, %54 : vector<2x32xi1>, vector<2x32xf32>
    %80 = arith.select %78, %74, %55 : vector<2x32xi1>, vector<2x32xf32>
    %cst_21 = arith.constant 0.000000e+00 : f32
    %81 = vector.broadcast %cst_21 : f32 to vector<2x32xf32>
    %82 = arith.select %78, %76, %81 : vector<2x32xi1>, vector<2x32xf32>
    %c0_22 = arith.constant 0 : index
    %c1 = arith.constant 1 : index
    %c0_23 = arith.constant 0 : index
    %83 = vector.load %arg4[%c0_22, %c1, %c0_23] : memref<2x8x32xf32, #tpu.memory_space<vmem>>, vector<2x1x32xf32>
    %84 = vector.shape_cast %83 : vector<2x1x32xf32> to vector<2x32xf32>
    %85 = vector.shape_cast %82 : vector<2x32xf32> to vector<2x1x32xf32>
    tpu.vector_store %arg4[%c0_22, %c1, %c0_23], %85 {strides = array<i32>} : memref<2x8x32xf32, #tpu.memory_space<vmem>>, vector<2x1x32xf32>,
    %86 = arith.truncf %79 : vector<2x32xf32> to vector<2x32xbf16>
    %cst_24 = arith.constant dense<0.000000e+00> : vector<2x128xf32>
    %87 = tpu.matmul %86, %18, %cst_24 {dimension_numbers = #tpu.dot_dimension_numbers<[1], [0], [0], [1], [0, 0, 1, 1], [], []>} : vector<2x32xbf16>, vector<32x128xbf16>, vector<2x128xf32> -> vector<2x128xf32>
    %88 = arith.addf %12, %87 : vector<2x128xf32>
    %89 = arith.mulf %88, %27 : vector<2x128xf32>
    %90 = math.tanh %89 : vector<2x128xf32>
    %91 = arith.mulf %90, %27 : vector<2x128xf32>
    %92 = arith.addf %91, %30 : vector<2x128xf32>
    %93 = vector.extract_strided_slice %92 {offsets = [0, 0], sizes = [2, 32], strides = [1, 1]} : vector<2x128xf32> to vector<2x32xf32>
    %94 = vector.extract_strided_slice %92 {offsets = [0, 32], sizes = [2, 32], strides = [1, 1]} : vector<2x128xf32> to vector<2x32xf32>
    %95 = vector.extract_strided_slice %92 {offsets = [0, 64], sizes = [2, 32], strides = [1, 1]} : vector<2x128xf32> to vector<2x32xf32>
    %96 = vector.extract_strided_slice %92 {offsets = [0, 96], sizes = [2, 32], strides = [1, 1]} : vector<2x128xf32> to vector<2x32xf32>
    %97 = arith.mulf %94, %80 : vector<2x32xf32>
    %98 = arith.mulf %93, %95 : vector<2x32xf32>
    %99 = arith.addf %97, %98 : vector<2x32xf32>
    %100 = math.tanh %99 : vector<2x32xf32>
    %101 = arith.mulf %96, %100 : vector<2x32xf32>
    %c2_i32 = arith.constant 2 : i32
    %102 = vector.broadcast %c2_i32 : i32 to vector<2x32xi32>
    %103 = arith.cmpi sgt, %33, %102 : vector<2x32xi32>
    %104 = arith.select %103, %101, %79 : vector<2x32xi1>, vector<2x32xf32>
    %105 = arith.select %103, %99, %80 : vector<2x32xi1>, vector<2x32xf32>
    %cst_25 = arith.constant 0.000000e+00 : f32
    %106 = vector.broadcast %cst_25 : f32 to vector<2x32xf32>
    %107 = arith.select %103, %101, %106 : vector<2x32xi1>, vector<2x32xf32>
    %c0_26 = arith.constant 0 : index
    %c2 = arith.constant 2 : index
    %c0_27 = arith.constant 0 : index
    %108 = vector.load %arg4[%c0_26, %c2, %c0_27] : memref<2x8x32xf32, #tpu.memory_space<vmem>>, vector<2x1x32xf32>
    %109 = vector.shape_cast %108 : vector<2x1x32xf32> to vector<2x32xf32>
    %110 = vector.shape_cast %107 : vector<2x32xf32> to vector<2x1x32xf32>
    tpu.vector_store %arg4[%c0_26, %c2, %c0_27], %110 {strides = array<i32>} : memref<2x8x32xf32, #tpu.memory_space<vmem>>, vector<2x1x32xf32>,
    %111 = arith.truncf %104 : vector<2x32xf32> to vector<2x32xbf16>
    %cst_28 = arith.constant dense<0.000000e+00> : vector<2x128xf32>
    %112 = tpu.matmul %111, %18, %cst_28 {dimension_numbers = #tpu.dot_dimension_numbers<[1], [0], [0], [1], [0, 0, 1, 1], [], []>} : vector<2x32xbf16>, vector<32x128xbf16>, vector<2x128xf32> -> vector<2x128xf32>
    %113 = arith.addf %13, %112 : vector<2x128xf32>
    %114 = arith.mulf %113, %27 : vector<2x128xf32>
    %115 = math.tanh %114 : vector<2x128xf32>
    %116 = arith.mulf %115, %27 : vector<2x128xf32>
    %117 = arith.addf %116, %30 : vector<2x128xf32>
    %118 = vector.extract_strided_slice %117 {offsets = [0, 0], sizes = [2, 32], strides = [1, 1]} : vector<2x128xf32> to vector<2x32xf32>
    %119 = vector.extract_strided_slice %117 {offsets = [0, 32], sizes = [2, 32], strides = [1, 1]} : vector<2x128xf32> to vector<2x32xf32>
    %120 = vector.extract_strided_slice %117 {offsets = [0, 64], sizes = [2, 32], strides = [1, 1]} : vector<2x128xf32> to vector<2x32xf32>
    %121 = vector.extract_strided_slice %117 {offsets = [0, 96], sizes = [2, 32], strides = [1, 1]} : vector<2x128xf32> to vector<2x32xf32>
    %122 = arith.mulf %119, %105 : vector<2x32xf32>
    %123 = arith.mulf %118, %120 : vector<2x32xf32>
    %124 = arith.addf %122, %123 : vector<2x32xf32>
    %125 = math.tanh %124 : vector<2x32xf32>
    %126 = arith.mulf %121, %125 : vector<2x32xf32>
    %c3_i32 = arith.constant 3 : i32
    %127 = vector.broadcast %c3_i32 : i32 to vector<2x32xi32>
    %128 = arith.cmpi sgt, %33, %127 : vector<2x32xi32>
    %129 = arith.select %128, %126, %104 : vector<2x32xi1>, vector<2x32xf32>
    %130 = arith.select %128, %124, %105 : vector<2x32xi1>, vector<2x32xf32>
    %cst_29 = arith.constant 0.000000e+00 : f32
    %131 = vector.broadcast %cst_29 : f32 to vector<2x32xf32>
    %132 = arith.select %128, %126, %131 : vector<2x32xi1>, vector<2x32xf32>
    %c0_30 = arith.constant 0 : index
    %c3 = arith.constant 3 : index
    %c0_31 = arith.constant 0 : index
    %133 = vector.load %arg4[%c0_30, %c3, %c0_31] : memref<2x8x32xf32, #tpu.memory_space<vmem>>, vector<2x1x32xf32>
    %134 = vector.shape_cast %133 : vector<2x1x32xf32> to vector<2x32xf32>
    %135 = vector.shape_cast %132 : vector<2x32xf32> to vector<2x1x32xf32>
    tpu.vector_store %arg4[%c0_30, %c3, %c0_31], %135 {strides = array<i32>} : memref<2x8x32xf32, #tpu.memory_space<vmem>>, vector<2x1x32xf32>,
    %136 = arith.truncf %129 : vector<2x32xf32> to vector<2x32xbf16>
    %cst_32 = arith.constant dense<0.000000e+00> : vector<2x128xf32>
    %137 = tpu.matmul %136, %18, %cst_32 {dimension_numbers = #tpu.dot_dimension_numbers<[1], [0], [0], [1], [0, 0, 1, 1], [], []>} : vector<2x32xbf16>, vector<32x128xbf16>, vector<2x128xf32> -> vector<2x128xf32>
    %138 = arith.addf %14, %137 : vector<2x128xf32>
    %139 = arith.mulf %138, %27 : vector<2x128xf32>
    %140 = math.tanh %139 : vector<2x128xf32>
    %141 = arith.mulf %140, %27 : vector<2x128xf32>
    %142 = arith.addf %141, %30 : vector<2x128xf32>
    %143 = vector.extract_strided_slice %142 {offsets = [0, 0], sizes = [2, 32], strides = [1, 1]} : vector<2x128xf32> to vector<2x32xf32>
    %144 = vector.extract_strided_slice %142 {offsets = [0, 32], sizes = [2, 32], strides = [1, 1]} : vector<2x128xf32> to vector<2x32xf32>
    %145 = vector.extract_strided_slice %142 {offsets = [0, 64], sizes = [2, 32], strides = [1, 1]} : vector<2x128xf32> to vector<2x32xf32>
    %146 = vector.extract_strided_slice %142 {offsets = [0, 96], sizes = [2, 32], strides = [1, 1]} : vector<2x128xf32> to vector<2x32xf32>
    %147 = arith.mulf %144, %130 : vector<2x32xf32>
    %148 = arith.mulf %143, %145 : vector<2x32xf32>
    %149 = arith.addf %147, %148 : vector<2x32xf32>
    %150 = math.tanh %149 : vector<2x32xf32>
    %151 = arith.mulf %146, %150 : vector<2x32xf32>
    %c4_i32 = arith.constant 4 : i32
    %152 = vector.broadcast %c4_i32 : i32 to vector<2x32xi32>
    %153 = arith.cmpi sgt, %33, %152 : vector<2x32xi32>
    %154 = arith.select %153, %151, %129 : vector<2x32xi1>, vector<2x32xf32>
    %155 = arith.select %153, %149, %130 : vector<2x32xi1>, vector<2x32xf32>
    %cst_33 = arith.constant 0.000000e+00 : f32
    %156 = vector.broadcast %cst_33 : f32 to vector<2x32xf32>
    %157 = arith.select %153, %151, %156 : vector<2x32xi1>, vector<2x32xf32>
    %c0_34 = arith.constant 0 : index
    %c4 = arith.constant 4 : index
    %c0_35 = arith.constant 0 : index
    %158 = vector.load %arg4[%c0_34, %c4, %c0_35] : memref<2x8x32xf32, #tpu.memory_space<vmem>>, vector<2x1x32xf32>
    %159 = vector.shape_cast %158 : vector<2x1x32xf32> to vector<2x32xf32>
    %160 = vector.shape_cast %157 : vector<2x32xf32> to vector<2x1x32xf32>
    tpu.vector_store %arg4[%c0_34, %c4, %c0_35], %160 {strides = array<i32>} : memref<2x8x32xf32, #tpu.memory_space<vmem>>, vector<2x1x32xf32>,
    %161 = arith.truncf %154 : vector<2x32xf32> to vector<2x32xbf16>
    %cst_36 = arith.constant dense<0.000000e+00> : vector<2x128xf32>
    %162 = tpu.matmul %161, %18, %cst_36 {dimension_numbers = #tpu.dot_dimension_numbers<[1], [0], [0], [1], [0, 0, 1, 1], [], []>} : vector<2x32xbf16>, vector<32x128xbf16>, vector<2x128xf32> -> vector<2x128xf32>
    %163 = arith.addf %15, %162 : vector<2x128xf32>
    %164 = arith.mulf %163, %27 : vector<2x128xf32>
    %165 = math.tanh %164 : vector<2x128xf32>
    %166 = arith.mulf %165, %27 : vector<2x128xf32>
    %167 = arith.addf %166, %30 : vector<2x128xf32>
    %168 = vector.extract_strided_slice %167 {offsets = [0, 0], sizes = [2, 32], strides = [1, 1]} : vector<2x128xf32> to vector<2x32xf32>
    %169 = vector.extract_strided_slice %167 {offsets = [0, 32], sizes = [2, 32], strides = [1, 1]} : vector<2x128xf32> to vector<2x32xf32>
    %170 = vector.extract_strided_slice %167 {offsets = [0, 64], sizes = [2, 32], strides = [1, 1]} : vector<2x128xf32> to vector<2x32xf32>
    %171 = vector.extract_strided_slice %167 {offsets = [0, 96], sizes = [2, 32], strides = [1, 1]} : vector<2x128xf32> to vector<2x32xf32>
    %172 = arith.mulf %169, %155 : vector<2x32xf32>
    %173 = arith.mulf %168, %170 : vector<2x32xf32>
    %174 = arith.addf %172, %173 : vector<2x32xf32>
    %175 = math.tanh %174 : vector<2x32xf32>
    %176 = arith.mulf %171, %175 : vector<2x32xf32>
    %c5_i32 = arith.constant 5 : i32
    %177 = vector.broadcast %c5_i32 : i32 to vector<2x32xi32>
    %178 = arith.cmpi sgt, %33, %177 : vector<2x32xi32>
    %179 = arith.select %178, %176, %154 : vector<2x32xi1>, vector<2x32xf32>
    %180 = arith.select %178, %174, %155 : vector<2x32xi1>, vector<2x32xf32>
    %cst_37 = arith.constant 0.000000e+00 : f32
    %181 = vector.broadcast %cst_37 : f32 to vector<2x32xf32>
    %182 = arith.select %178, %176, %181 : vector<2x32xi1>, vector<2x32xf32>
    %c0_38 = arith.constant 0 : index
    %c5 = arith.constant 5 : index
    %c0_39 = arith.constant 0 : index
    %183 = vector.load %arg4[%c0_38, %c5, %c0_39] : memref<2x8x32xf32, #tpu.memory_space<vmem>>, vector<2x1x32xf32>
    %184 = vector.shape_cast %183 : vector<2x1x32xf32> to vector<2x32xf32>
    %185 = vector.shape_cast %182 : vector<2x32xf32> to vector<2x1x32xf32>
    tpu.vector_store %arg4[%c0_38, %c5, %c0_39], %185 {strides = array<i32>} : memref<2x8x32xf32, #tpu.memory_space<vmem>>, vector<2x1x32xf32>,
    %186 = arith.truncf %179 : vector<2x32xf32> to vector<2x32xbf16>
    %cst_40 = arith.constant dense<0.000000e+00> : vector<2x128xf32>
    %187 = tpu.matmul %186, %18, %cst_40 {dimension_numbers = #tpu.dot_dimension_numbers<[1], [0], [0], [1], [0, 0, 1, 1], [], []>} : vector<2x32xbf16>, vector<32x128xbf16>, vector<2x128xf32> -> vector<2x128xf32>
    %188 = arith.addf %16, %187 : vector<2x128xf32>
    %189 = arith.mulf %188, %27 : vector<2x128xf32>
    %190 = math.tanh %189 : vector<2x128xf32>
    %191 = arith.mulf %190, %27 : vector<2x128xf32>
    %192 = arith.addf %191, %30 : vector<2x128xf32>
    %193 = vector.extract_strided_slice %192 {offsets = [0, 0], sizes = [2, 32], strides = [1, 1]} : vector<2x128xf32> to vector<2x32xf32>
    %194 = vector.extract_strided_slice %192 {offsets = [0, 32], sizes = [2, 32], strides = [1, 1]} : vector<2x128xf32> to vector<2x32xf32>
    %195 = vector.extract_strided_slice %192 {offsets = [0, 64], sizes = [2, 32], strides = [1, 1]} : vector<2x128xf32> to vector<2x32xf32>
    %196 = vector.extract_strided_slice %192 {offsets = [0, 96], sizes = [2, 32], strides = [1, 1]} : vector<2x128xf32> to vector<2x32xf32>
    %197 = arith.mulf %194, %180 : vector<2x32xf32>
    %198 = arith.mulf %193, %195 : vector<2x32xf32>
    %199 = arith.addf %197, %198 : vector<2x32xf32>
    %200 = math.tanh %199 : vector<2x32xf32>
    %201 = arith.mulf %196, %200 : vector<2x32xf32>
    %c6_i32 = arith.constant 6 : i32
    %202 = vector.broadcast %c6_i32 : i32 to vector<2x32xi32>
    %203 = arith.cmpi sgt, %33, %202 : vector<2x32xi32>
    %204 = arith.select %203, %201, %179 : vector<2x32xi1>, vector<2x32xf32>
    %205 = arith.select %203, %199, %180 : vector<2x32xi1>, vector<2x32xf32>
    %cst_41 = arith.constant 0.000000e+00 : f32
    %206 = vector.broadcast %cst_41 : f32 to vector<2x32xf32>
    %207 = arith.select %203, %201, %206 : vector<2x32xi1>, vector<2x32xf32>
    %c0_42 = arith.constant 0 : index
    %c6 = arith.constant 6 : index
    %c0_43 = arith.constant 0 : index
    %208 = vector.load %arg4[%c0_42, %c6, %c0_43] : memref<2x8x32xf32, #tpu.memory_space<vmem>>, vector<2x1x32xf32>
    %209 = vector.shape_cast %208 : vector<2x1x32xf32> to vector<2x32xf32>
    %210 = vector.shape_cast %207 : vector<2x32xf32> to vector<2x1x32xf32>
    tpu.vector_store %arg4[%c0_42, %c6, %c0_43], %210 {strides = array<i32>} : memref<2x8x32xf32, #tpu.memory_space<vmem>>, vector<2x1x32xf32>,
    %211 = arith.truncf %204 : vector<2x32xf32> to vector<2x32xbf16>
    %cst_44 = arith.constant dense<0.000000e+00> : vector<2x128xf32>
    %212 = tpu.matmul %211, %18, %cst_44 {dimension_numbers = #tpu.dot_dimension_numbers<[1], [0], [0], [1], [0, 0, 1, 1], [], []>} : vector<2x32xbf16>, vector<32x128xbf16>, vector<2x128xf32> -> vector<2x128xf32>
    %213 = arith.addf %17, %212 : vector<2x128xf32>
    %214 = arith.mulf %213, %27 : vector<2x128xf32>
    %215 = math.tanh %214 : vector<2x128xf32>
    %216 = arith.mulf %215, %27 : vector<2x128xf32>
    %217 = arith.addf %216, %30 : vector<2x128xf32>
    %218 = vector.extract_strided_slice %217 {offsets = [0, 0], sizes = [2, 32], strides = [1, 1]} : vector<2x128xf32> to vector<2x32xf32>
    %219 = vector.extract_strided_slice %217 {offsets = [0, 32], sizes = [2, 32], strides = [1, 1]} : vector<2x128xf32> to vector<2x32xf32>
    %220 = vector.extract_strided_slice %217 {offsets = [0, 64], sizes = [2, 32], strides = [1, 1]} : vector<2x128xf32> to vector<2x32xf32>
    %221 = vector.extract_strided_slice %217 {offsets = [0, 96], sizes = [2, 32], strides = [1, 1]} : vector<2x128xf32> to vector<2x32xf32>
    %222 = arith.mulf %219, %205 : vector<2x32xf32>
    %223 = arith.mulf %218, %220 : vector<2x32xf32>
    %224 = arith.addf %222, %223 : vector<2x32xf32>
    %225 = math.tanh %224 : vector<2x32xf32>
    %226 = arith.mulf %221, %225 : vector<2x32xf32>
    %c7_i32 = arith.constant 7 : i32
    %227 = vector.broadcast %c7_i32 : i32 to vector<2x32xi32>
    %228 = arith.cmpi sgt, %33, %227 : vector<2x32xi32>
    %cst_45 = arith.constant 0.000000e+00 : f32
    %229 = vector.broadcast %cst_45 : f32 to vector<2x32xf32>
    %230 = arith.select %228, %226, %229 : vector<2x32xi1>, vector<2x32xf32>
    %c0_46 = arith.constant 0 : index
    %c7 = arith.constant 7 : index
    %c0_47 = arith.constant 0 : index
    %231 = vector.load %arg4[%c0_46, %c7, %c0_47] : memref<2x8x32xf32, #tpu.memory_space<vmem>>, vector<2x1x32xf32>
    %232 = vector.shape_cast %231 : vector<2x1x32xf32> to vector<2x32xf32>
    %233 = vector.shape_cast %230 : vector<2x32xf32> to vector<2x1x32xf32>
    tpu.vector_store %arg4[%c0_46, %c7, %c0_47], %233 {strides = array<i32>} : memref<2x8x32xf32, #tpu.memory_space<vmem>>, vector<2x1x32xf32>,
    return
  }
}

</mosaic_0001>

<bundles_post_ra>
// kernel: lstm_encoder_forward.1
= control target key start
LH: loop header
LB: loop body
LE: loop exit
PB: predicated region body
PF: predicated region fallthrough
CT: control target
= control target key end

     0   :  { %v729_v2 = vmov 0   ;;  %s933_s0 = inlined_call_operand.vmem [shape: s32[16,1], index: 0, kind: input, shape index: {}]   ;;  %s934_s1 = inlined_call_operand.vmem [shape: bf16[32,128], index: 1, kind: input, shape index: {}]   ;;  %s935_s2 = inlined_call_operand.vmem [shape: bf16[32,128], index: 2, kind: input, shape index: {}]   ;;  %s936_s3 = inlined_call_operand.vmem [shape: s32[2,1], index: 3, kind: input, shape index: {}]   ;;  %s937_s4 = inlined_call_operand.hbm [shape: f32[2,8,32], index: 4, kind: output, shape index: {}]  }
   0x1   :  { %v19_v0 = vld [vmem:[%s933_s0] sm:$0xff]  ;;  %v659_v1 = vld [vmem:[%s935_s2 + $0x8] sm:$0xff]  ;;  %669 = vset.pattern.permute.xlu0 %v729_v2  ;;  %670 = vset.pattern.permute.xlu2 %v729_v2 }
   0x2   :  { %9 = vsyncpa [#allocation3], 0  ;;  %24 = vperm.xlu0 %669, %v19_v0   ;;  %102 = vmatpush.bf16.msra.mxu1 %v659_v1  ;;  %v20_v3 = vld [vmem:[%s933_s0 + $0x8] sm:$0xff]  ;;  %v658_v4 = vld [vmem:[%s935_s2] sm:$0xff]  ;;  %v21_v7 = vlaneseq  ;;  %v730_v11 = vmov 0.0   ;;  %vm50_vm2 = vcmask 261120  }
   0x3   :  { %160 = vmatpush.bf16.msra.mxu2 %v659_v1  ;;  %230 = vmatpush.bf16.msra.mxu3 %v659_v1  ;;  %v657_v5 = vld [vmem:[%s934_s1 + $0x8] sm:$0xff]  ;;  %v656_v6 = vld [vmem:[%s934_s1] sm:$0xff]  ;;  %v731_v17 = vmov 0.5   ;;  %s732_s1 = smov 64   ;;  %s733_s2 = smov 32   ;;  %vm144_vm7 = vcmask 253952  }
   0x4   :  { %60 = vmatpush.bf16.msra.mxu0 %v657_v5  ;;  %v22_v9 = vand.u32 127, %v21_v7  ;;  %v77_v32 = vld [vmem:[%s936_s3] sm:$0x3]  ;;  %s734_s3 = smov 96   ;;  %s735_s28 = smov [#allocation2]  }
   0x5   :  { %s618_s29 = sshll.u32 %s735_s28, 4  ;;  %s620_s6 = sshll.u32 %s937_s4, 4  ;;  %s619_s29 = int_to_ptr.vmem [resolvable:$true] %s618_s29  ;;  %s621_s6 = int_to_ptr.hbm [resolvable:$true] %s620_s6 }
   0x6   :  { %103 = vmatpush.bf16.msra.mxu1 %v658_v4  ;;  %vm72_vm3 = vcmp.ge.s32.totalorder %v22_v9, 64  ;;  %vm73_vm4 = vcmp.lt.s32.totalorder %v22_v9, 96  ;;  %s736_s7 = smov 128   ;;  %s737_s8 = smov 8  }
   0x7   :  { %161 = vmatpush.bf16.msra.mxu2 %v658_v4  ;;  %231 = vmatpush.bf16.msra.mxu3 %v658_v4  ;;  %vm74_vm5 = vmand %vm72_vm3, %vm73_vm4 }
   0x8   :  { %61 = vmatpush.bf16.msra.mxu0 %v656_v6  ;;  %v782_v18 = vsel %vm74_vm5, 1.0, %v731_v17  ;;  %v788_v23 = vsel %vm74_vm5, 0.0, %v731_v17 }
   0x9   :  { %104 = vmatmul.bf16.vlgmr.msra.gmra.mxu1 %v729_v2 }
   0xa   :  { %27 = vperm.xlu0 %669, %v20_v3   ;;  %362 = vmatpush.bf16.msrb.mxu1 %v659_v1 }
   0xb   :  { %428 = vmatpush.bf16.msrb.mxu2 %v659_v1  ;;  %499 = vmatpush.bf16.msrb.mxu3 %v659_v1 }
   0xc   :  { %296 = vmatpush.bf16.msrb.mxu0 %v659_v1 }
   0xe   :  { %363 = vmatpush.bf16.msrb.mxu1 %v658_v4 }
   0xf   :  { %429 = vmatpush.bf16.msrb.mxu2 %v658_v4  ;;  %500 = vmatpush.bf16.msrb.mxu3 %v658_v4 }
  0x10   :  { %297 = vmatpush.bf16.msrb.mxu0 %v658_v4 }
  0x74   :  { %v25_v8 = vpop.permute.xlu0 %24 }
  0x75   :  { %vm29_vm0 = vcmp.eq.s32.totalorder %v22_v9, %v25_v8 }
  0x76   :  { %v31_v12 = vsel %vm29_vm0, 1.0, %v730_v11 }
  0x7c   :  { %v28_v10 = vpop.permute.xlu0 %27 }
  0x7d   :  { %vm30_vm1 = vcmp.eq.s32.totalorder %v22_v9, %v28_v10 }
  0x7e   :  { %v32_v13 = vsel %vm30_vm1, 1.0, %v730_v11 }
  0x7f   :  { %v33_v14 = vpack.c.bf16 %v32_v13, %v31_v12 }
  0x81   :  { %640 = vmatmul.msk.bf16.vlgmr.msra.gmra.mxu0 %vm50_vm2, %v33_v14 }
  0x82   :  { %565 = vmatpush.bf16.msra.mxu0 %v659_v1 }
  0x86   :  { %566 = vmatpush.bf16.msra.mxu0 %v658_v4  ;;  %v105_v15 = vpop.f32.mrf.mxu1 }
  0x8e   :  { %v107_v16 = vpop.f32.mrf.mxu1 }
  0xfe   :  { %v784_v19 = vpop.f32.mrf.mxu0 }
  0xff   :  { %v109_v20 = vadd.f32 %v105_v15, %v784_v19 }
 0x101   :  { %v110_v21 = vmul.f32 %v109_v20, %v782_v18 }
 0x103   :  { %671 = vtanh.f32 %v110_v21 }
 0x109   :  { %v672_v22 = vpop.eup %671 }
 0x10a   :  { %v112_v24 = vmul.f32 %v672_v22, %v782_v18 }
 0x10c   :  { %v113_v25 = vadd.f32 %v112_v24, %v788_v23 }
 0x10e   :  { %116 = vrot.lane.b32.xlu1 %v113_v25, %s732_s1  ;;  %v114_v28 = vmul.f32 0.0, %v113_v25 }
 0x180   :  { %v117_v26 = vpop.permute.xlu1 %116 }
 0x181   :  { %v119_v27 = vmul.f32 %v117_v26, %v113_v25 }
 0x183   :  { %121 = vrot.lane.b32.xlu1 %v119_v27, %s733_s2 }
 0x1f5   :  { %v122_v29 = vpop.permute.xlu1 %121 }
 0x1f6   :  { %v124_v30 = vadd.f32 %v122_v29, %v114_v28 }
 0x1f8   :  { %673 = vtanh.f32 %v124_v30 }
 0x1fe   :  { %v674_v31 = vpop.eup %673 }
 0x1ff   :  { %127 = vrot.lane.b32.xlu2 %v674_v31, %s732_s1 }
 0x207   :  { %79 = vperm.xlu2 %670, %v77_v32  }
 0x259   :  { %v128_v33 = vpop.permute.xlu2 %127 }
 0x25a   :  { %v130_v34 = vmul.f32 %v128_v33, %v113_v25 }
 0x261   :  { %v798_v35 = vpop.permute.xlu2 %79 }
 0x262   :  { %vm131_vm6 = vcmp.gt.s32.totalorder %v798_v35, 0  ;;  %vm195_vm8 = vcmp.gt.s32.totalorder %v798_v35, 1  ;;  %vm267_vm9 = vcmp.gt.s32.totalorder %v798_v35, 2  ;;  %vm333_vm10 = vcmp.gt.s32.totalorder %v798_v35, 3 }
 0x263   :  { %v803_v36 = vsel %vm131_vm6, %v130_v34, 0.0  ;;  %v133_v49 = vsel %vm131_vm6, %v124_v30, 0.0  ;;  %vm395_vm11 = vcmp.gt.s32.totalorder %v798_v35, 4  ;;  %vm463_vm12 = vcmp.gt.s32.totalorder %v798_v35, 5 }
 0x264   :  { %v147_v37 = vpack.c.bf16 %v803_v36, %v803_v36  ;;  %v176_v50 = vrot.slane %v133_v49, 6  ;;  %vm536_vm13 = vcmp.gt.s32.totalorder %v798_v35, 6  ;;  %vm602_vm14 = vcmp.gt.s32.totalorder %v798_v35, 7 }
 0x266   :  { %149 = vrot.lane.b32.xlu0 %v147_v37, %s733_s2  ;;  %v842_v37 = vpop.f32.mrf.mxu0 }
 0x2d8   :  { %v150_v38 = vpop.permute.xlu0 %149 }
 0x2d9   :  { %649 = vmatmul.msk.bf16.vlgmr.msra.gmra.mxu2 %vm50_vm2, %v150_v38 }
 0x35c   :  { %v163_v39 = vpop.f32.mrf.mxu2 }
 0x35d   :  { %v168_v40 = vrot.slane %v163_v39, 6 }
 0x35f   :  { %v170_v41 = vadd.f32 %v168_v40, %v784_v19 }
 0x361   :  { %v171_v42 = vmul.f32 %v170_v41, %v782_v18 }
 0x363   :  { %675 = vtanh.f32 %v171_v42 }
 0x364   :  { %v165_v43 = vpop.f32.mrf.mxu2 }
 0x369   :  { %v676_v44 = vpop.eup %675 }
 0x36a   :  { %v173_v45 = vmul.f32 %v676_v44, %v782_v18 }
 0x36c   :  { %v174_v46 = vadd.f32 %v173_v45, %v788_v23 }
 0x36e   :  { %180 = vrot.lane.b32.xlu1 %v174_v46, %s732_s1  ;;  %v178_v51 = vmul.f32 %v176_v50, %v174_v46 }
 0x3e0   :  { %v181_v47 = vpop.permute.xlu1 %180 }
 0x3e1   :  { %v183_v48 = vmul.f32 %v181_v47, %v174_v46 }
 0x3e3   :  { %185 = vrot.lane.b32.xlu2 %v183_v48, %s733_s2 }
 0x3eb   :  { %201 = vrot.lane.b32.xlu2 %v803_v36, %s733_s2 }
 0x43d   :  { %v186_v52 = vpop.permute.xlu2 %185 }
 0x43e   :  { %v188_v53 = vadd.f32 %v186_v52, %v178_v51 }
 0x440   :  { %677 = vtanh.f32 %v188_v53  ;;  %v206_v55 = vrot.slane %v188_v53, 2 }
 0x445   :  { %v202_v59 = vpop.permute.xlu2 %201 }
 0x446   :  { %v678_v54 = vpop.eup %677 }
 0x447   :  { %191 = vrot.lane.b32.xlu0 %v678_v54, %s732_s1 }
 0x44f   :  { %207 = vrot.lane.b32.xlu0 %v206_v55, %s734_s3 }
 0x4b9   :  { %v192_v56 = vpop.permute.xlu0 %191 }
 0x4ba   :  { %v194_v57 = vmul.f32 %v192_v56, %v174_v46 }
 0x4bc   :  { %v197_v58 = vrot.slane %v194_v57, 2 }
 0x4be   :  { %198 = vrot.lane.b32.xlu1 %v197_v58, %s733_s2 }
 0x4c1   :  { %v208_v1 = vpop.permute.xlu0 %207 }
 0x4c6   :  { %210 = vrot.lane.b32.xlu1 %v133_v49, %s734_s3 }
 0x530   :  { %v199_v60 = vpop.permute.xlu1 %198 }
 0x531   :  { %v204_v61 = vsel %vm195_vm8, %v199_v60, %v202_v59  ;;  %v214_v62 = vsel %vm195_vm8, %v199_v60, 0.0 }
 0x532   :  { %v216_v63 = vrot.slane %v214_v62, 1  ;;  %218 = vst.msk [vmem:[#allocation2 + $0x1] sm:$0x1] %vm144_vm7, %v214_v62  ;;  %v220_v0 = vpack.c.bf16 %v204_v61, %v204_v61 }
 0x534   :  { %219 = vst.msk [vmem:[#allocation2 + $0x9] sm:$0x1] %vm144_vm7, %v216_v63  ;;  %650 = vmatmul.msk.bf16.vlgmr.msra.gmra.mxu3 %vm50_vm2, %v220_v0 }
 0x538   :  { %v211_v2 = vpop.permute.xlu1 %210 }
 0x539   :  { %v213_v3 = vsel %vm195_vm8, %v208_v1, %v211_v2 }
 0x53a   :  { %v246_v4 = vrot.slane %v213_v3, 4 }
 0x53c   :  { %247 = vrot.lane.b32.xlu0 %v246_v4, %s733_s2 }
 0x5ae   :  { %v248_v15 = vpop.permute.xlu0 %247 }
 0x5b7   :  { %v233_v5 = vpop.f32.mrf.mxu3 }
 0x5b8   :  { %v238_v6 = vrot.slane %v233_v5, 4 }
 0x5ba   :  { %v240_v7 = vadd.f32 %v238_v6, %v784_v19 }
 0x5bc   :  { %v241_v8 = vmul.f32 %v240_v7, %v782_v18 }
 0x5be   :  { %679 = vtanh.f32 %v241_v8 }
 0x5bf   :  { %v235_v9 = vpop.f32.mrf.mxu3 }
 0x5c4   :  { %v680_v10 = vpop.eup %679 }
 0x5c5   :  { %v243_v11 = vmul.f32 %v680_v10, %v782_v18 }
 0x5c7   :  { %v244_v12 = vadd.f32 %v243_v11, %v788_v23 }
 0x5c9   :  { %252 = vrot.lane.b32.xlu2 %v244_v12, %s732_s1  ;;  %v250_v16 = vmul.f32 %v248_v15, %v244_v12 }
 0x623   :  { %v253_v13 = vpop.permute.xlu2 %252 }
 0x624   :  { %v255_v14 = vmul.f32 %v253_v13, %v244_v12 }
 0x626   :  { %257 = vrot.lane.b32.xlu1 %v255_v14, %s733_s2 }
 0x698   :  { %v258_v17 = vpop.permute.xlu1 %257 }
 0x699   :  { %v260_v20 = vadd.f32 %v258_v17, %v250_v16 }
 0x69b   :  { %681 = vtanh.f32 %v260_v20  ;;  %v275_v21 = vrot.slane %v260_v20, 4 }
 0x69d   :  { %276 = vrot.lane.b32.xlu1 %v275_v21, %s734_s3 }
 0x6a1   :  { %v682_v22 = vpop.eup %681 }
 0x6a2   :  { %263 = vrot.lane.b32.xlu2 %v682_v22, %s732_s1 }
 0x6fc   :  { %v264_v24 = vpop.permute.xlu2 %263 }
 0x6fd   :  { %v266_v25 = vmul.f32 %v264_v24, %v244_v12 }
 0x6ff   :  { %v269_v26 = vrot.slane %v266_v25, 4 }
 0x701   :  { %270 = vrot.lane.b32.xlu0 %v269_v26, %s733_s2 }
 0x70f   :  { %v277_v27 = vpop.permute.xlu1 %276 }
 0x710   :  { %v279_v28 = vsel %vm267_vm9, %v277_v27, %v213_v3 }
 0x711   :  { %v312_v29 = vrot.slane %v279_v28, 2 }
 0x713   :  { %313 = vrot.lane.b32.xlu0 %v312_v29, %s733_s2 }
 0x773   :  { %v271_v30 = vpop.permute.xlu0 %270 }
 0x774   :  { %v273_v31 = vsel %vm267_vm9, %v271_v30, %v204_v61  ;;  %v280_v32 = vsel %vm267_vm9, %v271_v30, 0.0 }
 0x775   :  { %v282_v33 = vrot.slane %v280_v32, 1  ;;  %284 = vst.msk [vmem:[#allocation2 + $0x2] sm:$0x1] %vm144_vm7, %v280_v32  ;;  %v286_v34 = vpack.c.bf16 %v273_v31, %v273_v31 }
 0x777   :  { %285 = vst.msk [vmem:[#allocation2 + $0xa] sm:$0x1] %vm144_vm7, %v282_v33  ;;  %651 = vmatmul.msk.bf16.vlgmr.msrb.gmra.mxu0 %vm50_vm2, %v286_v34 }
 0x785   :  { %v314_v48 = vpop.permute.xlu0 %313 }
 0x7f4   :  { %v299_v38 = vpop.f32.mrf.mxu0 }
 0x7f5   :  { %v304_v39 = vrot.slane %v299_v38, 2 }
 0x7f7   :  { %v306_v40 = vadd.f32 %v304_v39, %v784_v19 }
 0x7f9   :  { %v307_v41 = vmul.f32 %v306_v40, %v782_v18 }
 0x7fb   :  { %683 = vtanh.f32 %v307_v41 }
 0x7fc   :  { %v301_v42 = vpop.f32.mrf.mxu0 }
 0x801   :  { %v684_v43 = vpop.eup %683 }
 0x802   :  { %v309_v44 = vmul.f32 %v684_v43, %v782_v18 }
 0x804   :  { %v310_v45 = vadd.f32 %v309_v44, %v788_v23 }
 0x806   :  { %318 = vrot.lane.b32.xlu2 %v310_v45, %s732_s1  ;;  %v316_v49 = vmul.f32 %v314_v48, %v310_v45 }
 0x860   :  { %v319_v46 = vpop.permute.xlu2 %318 }
 0x861   :  { %v321_v47 = vmul.f32 %v319_v46, %v310_v45 }
 0x863   :  { %323 = vrot.lane.b32.xlu1 %v321_v47, %s733_s2 }
 0x8d5   :  { %v324_v50 = vpop.permute.xlu1 %323 }
 0x8d6   :  { %v326_v51 = vadd.f32 %v324_v50, %v316_v49 }
 0x8d8   :  { %685 = vtanh.f32 %v326_v51  ;;  %v341_v19 = vrot.slane %v326_v51, 6 }
 0x8da   :  { %342 = vrot.lane.b32.xlu1 %v341_v19, %s734_s3 }
 0x8de   :  { %v686_v52 = vpop.eup %685 }
 0x8df   :  { %329 = vrot.lane.b32.xlu2 %v686_v52, %s732_s1 }
 0x939   :  { %v330_v53 = vpop.permute.xlu2 %329 }
 0x93a   :  { %v332_v54 = vmul.f32 %v330_v53, %v310_v45 }
 0x93c   :  { %v335_v55 = vrot.slane %v332_v54, 6 }
 0x93e   :  { %336 = vrot.lane.b32.xlu0 %v335_v55, %s733_s2 }
 0x94c   :  { %v343_v56 = vpop.permute.xlu1 %342 }
 0x94d   :  { %v345_v57 = vsel %vm333_vm10, %v343_v56, %v279_v28 }
 0x94e   :  { %375 = vrot.lane.b32.xlu0 %v345_v57, %s733_s2 }
 0x9b0   :  { %v337_v58 = vpop.permute.xlu0 %336 }
 0x9b1   :  { %v346_v59 = vsel %vm333_vm10, %v337_v58, 0.0  ;;  %v339_v60 = vsel %vm333_vm10, %v337_v58, %v273_v31 }
 0x9b2   :  { %v348_v61 = vrot.slane %v346_v59, 1  ;;  %350 = vst.msk [vmem:[#allocation2 + $0x3] sm:$0x1] %vm144_vm7, %v346_v59  ;;  %397 = vrot.lane.b32.xlu0 %v339_v60, %s734_s3  ;;  %v352_v62 = vpack.c.bf16 %v339_v60, %v339_v60 }
 0x9b4   :  { %351 = vst.msk [vmem:[#allocation2 + $0xb] sm:$0x1] %vm144_vm7, %v348_v61  ;;  %652 = vmatmul.msk.bf16.vlgmr.msrb.gmra.mxu1 %vm50_vm2, %v352_v62 }
 0x9c0   :  { %v376_v8 = vpop.permute.xlu0 %375 }
 0xa24   :  { %v398_v15 = vpop.permute.xlu0 %397 }
 0xa31   :  { %v365_v63 = vpop.f32.mrf.mxu1 }
 0xa32   :  { %v369_v0 = vadd.f32 %v365_v63, %v842_v37 }
 0xa34   :  { %v370_v1 = vmul.f32 %v369_v0, %v782_v18 }
 0xa36   :  { %687 = vtanh.f32 %v370_v1 }
 0xa39   :  { %v367_v2 = vpop.f32.mrf.mxu1 }
 0xa3c   :  { %v688_v3 = vpop.eup %687 }
 0xa3d   :  { %v372_v4 = vmul.f32 %v688_v3, %v782_v18 }
 0xa3f   :  { %v373_v5 = vadd.f32 %v372_v4, %v788_v23 }
 0xa41   :  { %380 = vrot.lane.b32.xlu2 %v373_v5, %s732_s1  ;;  %v378_v9 = vmul.f32 %v376_v8, %v373_v5 }
 0xa9b   :  { %v381_v6 = vpop.permute.xlu2 %380 }
 0xa9c   :  { %v383_v7 = vmul.f32 %v381_v6, %v373_v5 }
 0xa9e   :  { %385 = vrot.lane.b32.xlu1 %v383_v7, %s733_s2 }
 0xb10   :  { %v386_v10 = vpop.permute.xlu1 %385 }
 0xb11   :  { %v388_v11 = vadd.f32 %v386_v10, %v378_v9 }
 0xb13   :  { %689 = vtanh.f32 %v388_v11  ;;  %v401_v32 = vsel %vm395_vm11, %v388_v11, %v376_v8 }
 0xb14   :  { %v444_v33 = vrot.slane %v401_v32, 6 }
 0xb19   :  { %v690_v12 = vpop.eup %689 }
 0xb1a   :  { %391 = vrot.lane.b32.xlu2 %v690_v12, %s732_s1 }
 0xb74   :  { %v392_v13 = vpop.permute.xlu2 %391 }
 0xb75   :  { %v866_v14 = vmul.f32 %v392_v13, %v373_v5 }
 0xb77   :  { %v400_v16 = vsel %vm395_vm11, %v866_v14, %v398_v15 }
 0xb78   :  { %v415_v17 = vpack.c.bf16 %v400_v16, %v400_v16 }
 0xb7a   :  { %417 = vrot.lane.b32.xlu1 %v415_v17, %s733_s2 }
 0xbec   :  { %v418_v20 = vpop.permute.xlu1 %417 }
 0xbed   :  { %653 = vmatmul.msk.bf16.vlgmr.msrb.gmra.mxu2 %vm50_vm2, %v418_v20 }
 0xc70   :  { %v431_v21 = vpop.f32.mrf.mxu2 }
 0xc71   :  { %v436_v22 = vrot.slane %v431_v21, 6 }
 0xc73   :  { %v438_v24 = vadd.f32 %v436_v22, %v842_v37 }
 0xc75   :  { %v439_v25 = vmul.f32 %v438_v24, %v782_v18 }
 0xc77   :  { %691 = vtanh.f32 %v439_v25 }
 0xc78   :  { %v433_v26 = vpop.f32.mrf.mxu2 }
 0xc7d   :  { %v692_v27 = vpop.eup %691 }
 0xc7e   :  { %v441_v28 = vmul.f32 %v692_v27, %v782_v18 }
 0xc80   :  { %v442_v29 = vadd.f32 %v441_v28, %v788_v23 }
 0xc82   :  { %448 = vrot.lane.b32.xlu2 %v442_v29, %s732_s1  ;;  %v446_v34 = vmul.f32 %v444_v33, %v442_v29 }
 0xcdc   :  { %v449_v30 = vpop.permute.xlu2 %448 }
 0xcdd   :  { %v451_v31 = vmul.f32 %v449_v30, %v442_v29 }
 0xcdf   :  { %453 = vrot.lane.b32.xlu0 %v451_v31, %s733_s2  ;;  %v136_v31 = vperm.slane %v803_v36, 0 }
 0xce7   :  { %470 = vrot.lane.b32.xlu0 %v400_v16, %s733_s2 }
 0xd51   :  { %v454_v38 = vpop.permute.xlu0 %453 }
 0xd52   :  { %v456_v39 = vadd.f32 %v454_v38, %v446_v34 }
 0xd54   :  { %693 = vtanh.f32 %v456_v39  ;;  %v475_v41 = vrot.slane %v456_v39, 2 }
 0xd59   :  { %v471_v45 = vpop.permute.xlu0 %470 }
 0xd5a   :  { %v694_v40 = vpop.eup %693 }
 0xd5b   :  { %459 = vrot.lane.b32.xlu1 %v694_v40, %s732_s1 }
 0xd63   :  { %476 = vrot.lane.b32.xlu1 %v475_v41, %s734_s3  ;;  %v135_v41 = vrot.slane %v803_v36, 1 }
 0xdcd   :  { %v460_v42 = vpop.permute.xlu1 %459 }
 0xdce   :  { %v462_v43 = vmul.f32 %v460_v42, %v442_v29  ;;  %v137_v42 = vperm.slane %v135_v41, 0 }
 0xdd0   :  { %v465_v44 = vrot.slane %v462_v43, 2 }
 0xdd2   :  { %466 = vrot.lane.b32.xlu2 %v465_v44, %s733_s2 }
 0xdd5   :  { %v477_v51 = vpop.permute.xlu1 %476 }
 0xdda   :  { %479 = vrot.lane.b32.xlu2 %v401_v32, %s734_s3 }
 0xe2c   :  { %v467_v46 = vpop.permute.xlu2 %466 }
 0xe2d   :  { %v473_v47 = vsel %vm463_vm12, %v467_v46, %v471_v45  ;;  %v483_v48 = vsel %vm463_vm12, %v467_v46, 0.0 }
 0xe2e   :  { %v485_v49 = vrot.slane %v483_v48, 1  ;;  %487 = vst.msk [vmem:[#allocation2 + $0x5] sm:$0x1] %vm144_vm7, %v483_v48  ;;  %v489_v50 = vpack.c.bf16 %v473_v47, %v473_v47 }
 0xe30   :  { %488 = vst.msk [vmem:[#allocation2 + $0xd] sm:$0x1] %vm144_vm7, %v485_v49  ;;  %654 = vmatmul.msk.bf16.vlgmr.msrb.gmra.mxu3 %vm50_vm2, %v489_v50 }
 0xe34   :  { %v480_v19 = vpop.permute.xlu2 %479 }
 0xe35   :  { %v482_v52 = vsel %vm463_vm12, %v477_v51, %v480_v19 }
 0xe36   :  { %v515_v53 = vrot.slane %v482_v52, 4 }
 0xe38   :  { %516 = vrot.lane.b32.xlu1 %v515_v53, %s733_s2 }
 0xeaa   :  { %v517_v0 = vpop.permute.xlu1 %516 }
 0xeb3   :  { %v502_v54 = vpop.f32.mrf.mxu3 }
 0xeb4   :  { %v507_v55 = vrot.slane %v502_v54, 4 }
 0xeb6   :  { %v509_v56 = vadd.f32 %v507_v55, %v842_v37 }
 0xeb8   :  { %v510_v57 = vmul.f32 %v509_v56, %v782_v18 }
 0xeba   :  { %695 = vtanh.f32 %v510_v57 }
 0xebb   :  { %v504_v58 = vpop.f32.mrf.mxu3 }
 0xec0   :  { %v696_v59 = vpop.eup %695 }
 0xec1   :  { %v512_v60 = vmul.f32 %v696_v59, %v782_v18 }
 0xec3   :  { %v513_v61 = vadd.f32 %v512_v60, %v788_v23 }
 0xec5   :  { %521 = vrot.lane.b32.xlu0 %v513_v61, %s732_s1  ;;  %v519_v1 = vmul.f32 %v517_v0, %v513_v61 }
 0xf37   :  { %v522_v62 = vpop.permute.xlu0 %521 }
 0xf38   :  { %v524_v63 = vmul.f32 %v522_v62, %v513_v61 }
 0xf3a   :  { %526 = vrot.lane.b32.xlu2 %v524_v63, %s733_s2 }
 0xf94   :  { %v527_v2 = vpop.permute.xlu2 %526 }
 0xf95   :  { %v529_v3 = vadd.f32 %v527_v2, %v519_v1 }
 0xf97   :  { %697 = vtanh.f32 %v529_v3  ;;  %v544_v4 = vrot.slane %v529_v3, 4 }
 0xf99   :  { %545 = vrot.lane.b32.xlu2 %v544_v4, %s734_s3 }
 0xf9d   :  { %v698_v5 = vpop.eup %697 }
 0xf9e   :  { %532 = vrot.lane.b32.xlu0 %v698_v5, %s732_s1 }
 0xff3   :  { %v546_v9 = vpop.permute.xlu2 %545 }
 0xff4   :  { %v548_v10 = vsel %vm536_vm13, %v546_v9, %v482_v52 }
 0xff5   :  { %v581_v11 = vrot.slane %v548_v10, 2 }
0x1010   :  { %v533_v6 = vpop.permute.xlu0 %532 }
0x1011   :  { %v535_v7 = vmul.f32 %v533_v6, %v513_v61 }
0x1013   :  { %v538_v8 = vrot.slane %v535_v7, 4 }
0x1015   :  { %539 = vrot.lane.b32.xlu1 %v538_v8, %s733_s2 }
0x101d   :  { %582 = vrot.lane.b32.xlu1 %v581_v11, %s733_s2 }
0x1087   :  { %v540_v12 = vpop.permute.xlu1 %539 }
0x1088   :  { %v542_v13 = vsel %vm536_vm13, %v540_v12, %v473_v47  ;;  %v549_v15 = vsel %vm536_vm13, %v540_v12, 0.0 }
0x1089   :  { %v551_v16 = vrot.slane %v549_v15, 1  ;;  %553 = vst.msk [vmem:[#allocation2 + $0x6] sm:$0x1] %vm144_vm7, %v549_v15  ;;  %v555_v17 = vpack.c.bf16 %v542_v13, %v542_v13 }
0x108b   :  { %554 = vst.msk [vmem:[#allocation2 + $0xe] sm:$0x1] %vm144_vm7, %v551_v16  ;;  %655 = vmatmul.msk.bf16.vlgmr.msra.gmra.mxu0 %vm50_vm2, %v555_v17 }
0x1108   :  { %v568_v20 = vpop.f32.mrf.mxu0 }
0x1109   :  { %v573_v21 = vrot.slane %v568_v20, 2 }
0x110b   :  { %v575_v22 = vadd.f32 %v573_v21, %v842_v37  ;;  %v402_v37 = vsel %vm395_vm11, %v866_v14, 0.0 }
0x110c   :  { %v404_v32 = vrot.slane %v402_v37, 1  ;;  %v405_v47 = vperm.slane %v402_v37, 0 }
0x110d   :  { %v576_v24 = vmul.f32 %v575_v22, %v782_v18 }
0x110e   :  { %v406_v33 = vperm.slane %v404_v32, 0 }
0x110f   :  { %699 = vtanh.f32 %v576_v24 }
0x1110   :  { %v570_v25 = vpop.f32.mrf.mxu0 }
0x1115   :  { %v700_v26 = vpop.eup %699 }
0x1116   :  { %v578_v27 = vmul.f32 %v700_v26, %v782_v18  ;;  %v583_v18 = vpop.permute.xlu1 %582 }
0x1118   :  { %v579_v28 = vadd.f32 %v578_v27, %v788_v23 }
0x111a   :  { %587 = vrot.lane.b32.xlu0 %v579_v28, %s732_s1  ;;  %v585_v23 = vmul.f32 %v583_v18, %v579_v28 }
0x118c   :  { %v588_v29 = vpop.permute.xlu0 %587 }
0x118d   :  { %v590_v30 = vmul.f32 %v588_v29, %v579_v28 }
0x118f   :  { %592 = vrot.lane.b32.xlu2 %v590_v30, %s733_s2 }
0x1197   :  { %138 = vrot.lane.b32.xlu2 %v136_v31, %s733_s2 }
0x119f   :  { %409 = vrot.lane.b32.xlu2 %v406_v33, %s733_s2 }
0x11e9   :  { %v593_v34 = vpop.permute.xlu2 %592 }
0x11ea   :  { %v595_v38 = vadd.f32 %v593_v34, %v585_v23 }
0x11ec   :  { %701 = vtanh.f32 %v595_v38 }
0x11f1   :  { %v139_v39 = vpop.permute.xlu2 %138 }
0x11f2   :  { %v702_v40 = vpop.eup %701  ;;  %145 = vst.msk [vmem:[#allocation2] sm:$0x1] %vm144_vm7, %v139_v39 }
0x11f3   :  { %598 = vrot.lane.b32.xlu0 %v702_v40, %s732_s1 }
0x11f9   :  { %v410_v14 = vpop.permute.xlu2 %409 }
0x11fa   :  { %414 = vst.msk [vmem:[#allocation2 + $0xc] sm:$0x1] %vm144_vm7, %v410_v14 }
0x11fb   :  { %140 = vrot.lane.b32.xlu0 %v137_v42, %s733_s2 }
0x1265   :  { %v599_v43 = vpop.permute.xlu0 %598 }
0x1266   :  { %v601_v44 = vmul.f32 %v599_v43, %v579_v28 }
0x1268   :  { %v604_v45 = vrot.slane %v601_v44, 6 }
0x126a   :  { %605 = vrot.lane.b32.xlu1 %v604_v45, %s733_s2 }
0x126d   :  { %v141_v46 = vpop.permute.xlu0 %140 }
0x126e   :  { %146 = vst.msk [vmem:[#allocation2 + $0x8] sm:$0x1] %vm144_vm7, %v141_v46 }
0x1272   :  { %407 = vrot.lane.b32.xlu1 %v405_v47, %s733_s2 }
0x12dc   :  { %v606_v36 = vpop.permute.xlu1 %605 }
0x12dd   :  { %v608_v48 = vsel %vm602_vm14, %v606_v36, 0.0 }
0x12de   :  { %v610_v49 = vrot.slane %v608_v48, 1  ;;  %612 = vst.msk [vmem:[#allocation2 + $0x7] sm:$0x1] %vm144_vm7, %v608_v48 }
0x12e0   :  { %613 = vst.msk [vmem:[#allocation2 + $0xf] sm:$0x1] %vm144_vm7, %v610_v49 }
0x12e4   :  { %v408_v50 = vpop.permute.xlu1 %407 }
0x12e5   :  { %413 = vst.msk [vmem:[#allocation2 + $0x4] sm:$0x1] %vm144_vm7, %v408_v50 }
0x12e6   :  { %626 = dma.vmem_to_hbm [thread:$0]  %s619_s29, 256, %s621_s6, [#allocation3], %s736_s7, %s736_s7, %s737_s8  }
0x12e7   :  { %727 = dma.done.wait [#allocation3], 256  }
0x12e8   :  { %728 = vsyncadd [#allocation3], 4294967040 }
0x12e9   :  { %631 = vsyncpa [#allocation3], 1 }

</bundles_post_ra>
